<compile_context>
chip_gen: v7x
topology: tpu7x:2x2x1
jax: 0.10.0
libtpu: 0.0.40
codegen_flags: <defaults>
</compile_context>

<pallas_src>
import jax
import jax.numpy as jnp
from jax.experimental import pallas as pl
from jax.experimental.pallas import tpu as pltpu


def _round_up(x: int, m: int) -> int:
    return ((x + m - 1) // m) * m


def _cdiv(a: int, b: int) -> int:
    return (a + b - 1) // b


def value_net_kernel(xT_ref, w1a_ref, w2_ref, b2_ref, o_ref):
    # fc1 on the MXU with b1 folded in as an augmented weight column (the last
    # row of x^T is all ones): [H, S+1] @ [S+1, TILE_B] -> [H, TILE_B].
    # Batch on lanes, f32 accumulation regardless of the streamed dtype.
    h = jnp.dot(w1a_ref[...], xT_ref[...], preferred_element_type=jnp.float32)
    # ReLU on the VPU (the bias add was absorbed into the matmul).
    h = jnp.maximum(h, 0.0)
    # fc2 as VPU multiply + cross-sublane (XLU) reduction instead of an N=1
    # matmul; fold b2 into the result. Lane-dense [1, TILE_B] output row.
    out = jnp.sum(h * w2_ref[...], axis=0, keepdims=True) + b2_ref[...]
    o_ref[...] = out.astype(o_ref.dtype)


def value_net_forward(x, w1, b1, w2, b2, *, tile_b=32768,
                      matmul_dtype=jnp.bfloat16,
                      vmem_budget_bytes=24 * 1024 * 1024):
    """ValueNet forward: relu(x @ w1.T + b1) @ w2.T + b2.

    x : [B, state_dim]
    w1: [hidden_dim, state_dim]   (PyTorch fc1.weight layout)
    b1: [hidden_dim]
    w2: [1, hidden_dim]           (PyTorch fc2.weight layout)
    b2: [1]
    returns [B, 1] in x.dtype.

    matmul_dtype: dtype the streamed x / augmented w1 are cast to for the fc1
    MXU matmul (default bf16 on all TPU generations — the MXU accumulates in
    f32 and the bias/ReLU/fc2 epilogue stays f32). Pass None for the bit-exact
    f32 path.
    """
    B, S = x.shape
    H = w1.shape[0]
    out_dtype = x.dtype

    k_dtype = jnp.dtype(x.dtype) if matmul_dtype is None else jnp.dtype(matmul_dtype)
    itemsize = k_dtype.itemsize

    # --- v7x-aware VMEM cap --------------------------------------------------
    # Per-batch-column bytes: x double-buffer + f32 fc1 intermediate + f32
    # output double-buffer. Resident params (constant index_map) are subtracted
    # from the budget. Budget of ~24 MiB keeps plenty of headroom on v7x
    # (64 MiB physical / 32 MiB scoped per TensorCore); v5e/v6e have more.
    bytes_per_col = 2 * (S + 1) * itemsize + H * 4 + 2 * 4
    resident = H * (S + 1) * itemsize + H * 4 + 4
    max_tile = max(128, ((vmem_budget_bytes - resident) // bytes_per_col) // 128 * 128)
    tile_cap = max(128, min(_round_up(int(tile_b), 128), max_tile))

    # --- grid / tile balancing -----------------------------------------------
    # Pick the number of steps first (>= 2 and even so both v7x TensorCores get
    # work under "parallel" sharding), then balance the tile so padding waste
    # stays under 128 columns per step.
    steps = max(2, _cdiv(B, tile_cap))
    if steps % 2:
        steps += 1
    tile = min(_round_up(_cdiv(B, steps), 128), tile_cap)
    b_padded = steps * tile

    # --- host-side prep (single fused pass) ----------------------------------
    # Cast FIRST (halves the transpose/pad traffic), then one fused
    # transpose + ones-row append (bias fold) + zero pad. Padded columns get a
    # 0 in the ones row, so their (garbage) outputs are just b2 and are sliced
    # off below — the raw slab must never be consumed directly.
    xk = x if matmul_dtype is None else x.astype(matmul_dtype)
    xT = jnp.concatenate([xk.T, jnp.ones((1, B), xk.dtype)], axis=0)   # [S+1, B]
    xT = jnp.pad(xT, ((0, 0), (0, b_padded - B)))                      # [S+1, Bp]

    # Augmented fc1 weight: bias folded in as an extra column (K: S -> S+1).
    w1a = jnp.concatenate([w1, b1.reshape(H, 1)], axis=1)
    if matmul_dtype is not None:
        w1a = w1a.astype(matmul_dtype)

    # fc2 params stay f32 (whole epilogue is f32), shaped to broadcast on lanes.
    w2c = w2.reshape(H, 1).astype(jnp.float32)
    b2c = b2.reshape(1, 1).astype(jnp.float32)

    out_slab = pl.pallas_call(
        value_net_kernel,
        out_shape=jax.ShapeDtypeStruct((1, b_padded), out_dtype),
        grid=(steps,),
        in_specs=[
            # x^T streamed over batch tiles (auto double-buffered DMA).
            pl.BlockSpec((S + 1, tile), lambda i: (0, i)),
            # Weights / biases: constant index_map => fetched once, then
            # VMEM-resident across all grid steps (no per-step re-DMA).
            pl.BlockSpec((H, S + 1), lambda i: (0, 0)),
            pl.BlockSpec((H, 1), lambda i: (0, 0)),
            pl.BlockSpec((1, 1), lambda i: (0, 0)),
        ],
        # Lane-dense output slab: full 128-lane stores, no last-dim-1 writes.
        out_specs=pl.BlockSpec((1, tile), lambda i: (0, i)),
        compiler_params=pltpu.CompilerParams(
            # "parallel" lets v7x shard the batch-tile axis over its 2 TCs
            # (pltpu.CORE_PARALLEL is the explicit alternative if needed).
            dimension_semantics=("parallel",),
            vmem_limit_bytes=32 * 1024 * 1024,   # <= 48 MiB, safe on v5e/v6e/v7x
        ),
    )(xT, w1a, w2c, b2c)

    # Layout plumbing only: slice off padding and restore the [B, 1] shape.
    return out_slab[0, :B].reshape(B, 1)


if __name__ == "__main__":
    batch = 2
    state_dim = 4
    hidden_dim = 32

    key = jax.random.PRNGKey(0)
    kx, k1, k2, k3, k4 = jax.random.split(key, 5)
    x = jax.random.normal(kx, (batch, state_dim), jnp.float32)

    # PyTorch nn.Linear default init, in PyTorch weight layout.
    bound1 = 1.0 / (state_dim ** 0.5)
    bound2 = 1.0 / (hidden_dim ** 0.5)
    w1 = jax.random.uniform(k1, (hidden_dim, state_dim), jnp.float32, -bound1, bound1)
    b1 = jax.random.uniform(k2, (hidden_dim,), jnp.float32, -bound1, bound1)
    w2 = jax.random.uniform(k3, (1, hidden_dim), jnp.float32, -bound2, bound2)
    b2 = jax.random.uniform(k4, (1,), jnp.float32, -bound2, bound2)

    # Pure-JAX reference of the PyTorch forward pass.
    ref = jnp.maximum(x @ w1.T + b1, 0.0) @ w2.T + b2

    # Bit-exact f32 path.
    out_f32 = value_net_forward(x, w1, b1, w2, b2, matmul_dtype=None)
    out_f32 = jax.block_until_ready(out_f32)
    assert out_f32.shape == (batch, 1)
    assert jnp.allclose(out_f32, ref, atol=1e-5, rtol=1e-5)

    # Default path: bf16-streamed fc1 (f32 MXU accumulation + f32 epilogue).
    out_def = value_net_forward(x, w1, b1, w2, b2)
    out_def = jax.block_until_ready(out_def)
    assert out_def.shape == (batch, 1)
    assert jnp.allclose(out_def, ref, atol=1e-1, rtol=1e-1)

    print("KERNEL_OK")
</pallas_src>

<mosaic_0001>
module attributes {stable_mosaic.version = 11 : i64} {
  func.func @value_net_kernel(%arg0: i32, %arg1: memref<5x128xf32, #tpu.memory_space<vmem>>, %arg2: memref<32x5xf32, #tpu.memory_space<vmem>>, %arg3: memref<32x1xf32, #tpu.memory_space<vmem>>, %arg4: memref<1x1xf32, #tpu.memory_space<vmem>>, %arg5: memref<1x128xf32, #tpu.memory_space<vmem>>) attributes {dimension_semantics = [#tpu.dimension_semantics<parallel>], iteration_bounds = array<i64: 2>, scalar_prefetch = 0 : i64, scratch_operands = 0 : i64, tpu.core_type = #tpu.core_type<tc>, window_params = [{transform_indices = @transform_0, window_bounds = array<i64: 5, 128>}, {pipeline_mode = #tpu.pipeline_mode<synchronous>, transform_indices = @transform_1, window_bounds = array<i64: 32, 5>}, {pipeline_mode = #tpu.pipeline_mode<synchronous>, transform_indices = @transform_2, window_bounds = array<i64: 32, 1>}, {pipeline_mode = #tpu.pipeline_mode<synchronous>, transform_indices = @transform_3, window_bounds = array<i64: 1, 1>}, {transform_indices = @transform_4, window_bounds = array<i64: 1, 128>}]} {
    %c0 = arith.constant 0 : index
    %c0_0 = arith.constant 0 : index
    %0 = vector.load %arg2[%c0, %c0_0] : memref<32x5xf32, #tpu.memory_space<vmem>>, vector<32x5xf32>
    %c0_1 = arith.constant 0 : index
    %c0_2 = arith.constant 0 : index
    %1 = vector.load %arg1[%c0_1, %c0_2] : memref<5x128xf32, #tpu.memory_space<vmem>>, vector<5x128xf32>
    %cst = arith.constant dense<0.000000e+00> : vector<32x128xf32>
    %2 = tpu.matmul %0, %1, %cst {dimension_numbers = #tpu.dot_dimension_numbers<[1], [0], [0], [1], [0, 0, 1, 1], [], []>} : vector<32x5xf32>, vector<5x128xf32>, vector<32x128xf32> -> vector<32x128xf32>
    %cst_3 = arith.constant 0.000000e+00 : f32
    %3 = vector.broadcast %cst_3 : f32 to vector<32x128xf32>
    %4 = arith.maximumf %2, %3 : vector<32x128xf32>
    %c0_4 = arith.constant 0 : index
    %c0_5 = arith.constant 0 : index
    %5 = vector.load %arg3[%c0_4, %c0_5] : memref<32x1xf32, #tpu.memory_space<vmem>>, vector<32x1xf32>
    %6 = vector.broadcast %5 : vector<32x1xf32> to vector<32x128xf32>
    %7 = arith.mulf %4, %6 : vector<32x128xf32>
    %cst_6 = arith.constant dense<0.000000e+00> : vector<128xf32>
    %8 = vector.multi_reduction <add>, %7, %cst_6 [0] : vector<32x128xf32> to vector<128xf32>
    %9 = vector.shape_cast %8 : vector<128xf32> to vector<1x128xf32>
    %c0_7 = arith.constant 0 : index
    %c0_8 = arith.constant 0 : index
    %10 = vector.load %arg4[%c0_7, %c0_8] : memref<1x1xf32, #tpu.memory_space<vmem>>, vector<1x1xf32>
    %11 = vector.broadcast %10 : vector<1x1xf32> to vector<1x128xf32>
    %12 = arith.addf %9, %11 : vector<1x128xf32>
    %c0_9 = arith.constant 0 : index
    %c0_10 = arith.constant 0 : index
    %13 = vector.load %arg5[%c0_9, %c0_10] : memref<1x128xf32, #tpu.memory_space<vmem>>, vector<1x128xf32>
    tpu.vector_store %arg5[%c0_9, %c0_10], %12 {strides = array<i32>} : memref<1x128xf32, #tpu.memory_space<vmem>>, vector<1x128xf32>,
    return
  }
  func.func @transform_0(%arg0: i32) -> (i32, i32) {
    %c0_i32 = arith.constant 0 : i32
    %c0_i32_0 = arith.constant 0 : i32
    return %c0_i32, %arg0 : i32, i32
  }
  func.func @transform_1(%arg0: i32) -> (i32, i32) {
    %c0_i32 = arith.constant 0 : i32
    %c0_i32_0 = arith.constant 0 : i32
    %c0_i32_1 = arith.constant 0 : i32
    return %c0_i32, %c0_i32_0 : i32, i32
  }
  func.func @transform_2(%arg0: i32) -> (i32, i32) {
    %c0_i32 = arith.constant 0 : i32
    %c0_i32_0 = arith.constant 0 : i32
    %c0_i32_1 = arith.constant 0 : i32
    return %c0_i32, %c0_i32_0 : i32, i32
  }
  func.func @transform_3(%arg0: i32) -> (i32, i32) {
    %c0_i32 = arith.constant 0 : i32
    %c0_i32_0 = arith.constant 0 : i32
    %c0_i32_1 = arith.constant 0 : i32
    return %c0_i32, %c0_i32_0 : i32, i32
  }
  func.func @transform_4(%arg0: i32) -> (i32, i32) {
    %c0_i32 = arith.constant 0 : i32
    %c0_i32_0 = arith.constant 0 : i32
    return %c0_i32, %arg0 : i32, i32
  }
}

</mosaic_0001>

<bundles_post_ra>
// kernel: tpu_custom_call.1
= control target key start
LH: loop header
LB: loop body
LE: loop exit
PB: predicated region body
PF: predicated region fallthrough
CT: control target
= control target key end

     0   :  { %s714_s0 = inlined_call_operand.vmem [shape: f32[5,256], index: 0, kind: input, shape index: {}]   ;;  %s715_s1 = inlined_call_operand.vmem [shape: f32[32,5], index: 1, kind: input, shape index: {}]   ;;  %s716_s2 = inlined_call_operand.vmem [shape: f32[32,1], index: 2, kind: input, shape index: {}]   ;;  %s717_s3 = inlined_call_operand.<no memory space> [shape: f32[1,1], index: 3, kind: input, shape index: {}]   ;;  %s718_s4 = inlined_call_operand.hbm [shape: f32[1,256], index: 4, kind: output, shape index: {}]  }
   0x1   :  { %v9_v0 = vstv %s717_s3 }
   0x2   :  { %10 = vst [vmem:[#allocation2] sm:$0x1] %v9_v0 }
   0x3   :  { %11 = vsyncpa [#allocation4], 0 }
   0x4   :  { %13 = vsyncpa [#allocation4 + $0x1], 0  ;;  %s586_s17 = smov 0   ;;  %s588_s18 = smov 0  }
   0x5   :  { %s590_s19 = smov 0   ;;  %s592_s20 = smov 0  }
   0x6 LB: > { %s607_s3 = sadd.s32 4294967295, %s554_s20   ;;  %s422_s21 = sadd.s32 4294967294, %s554_s20   ;;  %s554_s20 = sphi %s592_s20, %s724_s20   ;;  %s550_s19 = sphi %s590_s19, %s723_s19   ;;  %s546_s18 = sphi %s588_s18, %s722_s18   ;;  %s542_s17 = sphi %s586_s17, %s721_s17  }
   0x7   : > { %s611_s22 = sadd.s32 1, %s554_s20   ;;  %s115_s23 = sadd.s32 1, %s550_s19 }
   0x8   : > { %s112_s24 = ssub.s32 %s554_s20, %s611_s22  ;;  %p125_p0 = scmp.ne.s32.totalorder %s550_s19, %s546_s18 }
   0x9   : > { %p113_p1 = scmp.eq.s32.totalorder %s112_s24, 0  ;;  %p126_p2 = scmp.eq.s32.totalorder %s607_s3, 1 }
   0xa   : > { %p131_p3 = scmp.ne.s32.totalorder %s546_s18, %s542_s17  ;;  %p132_p4 = scmp.eq.s32.totalorder %s422_s21, 1 }
   0xb   : > { %s622_s25 = scalar_select %p113_p1, %s550_s19, %s115_s23  }
   0xc   : > { %p624_p5 = por %p126_p2, %p125_p0  ;;  %p628_p6 = por %p132_p4, %p131_p3 }
   0xd   : > { %p425_p7 = scmp.ge.s32.totalorder %s554_s20, 1  ;;  %p166_p8 = scmp.lt.s32.totalorder %s554_s20, 3 }
   0xf   : > { %p167_p9 = pnand %p425_p7, %p166_p8 }
  0x10   : > { %p190_p10 = scmp.lt.s32.totalorder (!%p167_p9), %s607_s3, 1  ;;  %v194_v1 = vld [vmem:[%s715_s1] sm:$0xff] (!%p167_p9)  ;;  %vm199_vm0 = vcmask (!%p167_p9), 39936   ;;  %v196_v2 = vld [vmem:[%s715_s1 + $0x10] sm:$0xff] (!%p167_p9)  ;;  %v556_v4 = vmov (!%p167_p9), 0   ;;  %vm212_vm1 = vcmask (!%p167_p9), 1044480   ;;  %v348_v30 = vlaneseq (!%p167_p9) }
  0x11   : > { %170 = sbr.rel (%p167_p9) target bundleno = 282 (0x11a), region = 36  ;;  %442 = vmatprep.mubr.msk.f32.mxu0 (!%p167_p9), %vm199_vm0, %v194_v1  ;;  %445 = vmatprep.mubr.msk.f32.mxu1 (!%p167_p9), %vm199_vm0, %v196_v2  ;;  %v305_v3 = vld [vmem:[%s716_s2] sm:$0xff] (!%p167_p9)  ;;  %v307_v5 = vld [vmem:[%s716_s2 + $0x10] sm:$0xff] (!%p167_p9)  ;;  %v195_v7 = vld [vmem:[%s715_s1 + $0x8] sm:$0xff] (!%p167_p9)  ;;  %s188_s5 = sand.u32 (!%p167_p9), 1, %s546_s18  }
  0x12   : > { %490 = vset.pattern.permute.xlu0 (!%p167_p9), %v556_v4  ;;  %491 = vset.pattern.permute.xlu1 (!%p167_p9), %v556_v4  ;;  %v197_v8 = vld [vmem:[%s715_s1 + $0x18] sm:$0xff] (!%p167_p9)  ;;  %v306_v9 = vld [vmem:[%s716_s2 + $0x8] sm:$0xff] (!%p167_p9)  ;;  %v342_v11 = vld [vmem:[#allocation2] sm:$0x1] (!%p167_p9)  ;;  %v349_v33 = vshrl.u32 (!%p167_p9), %v348_v30, 7  ;;  %s432_s6 = sshll.u32 (!%p167_p9), %s607_s3, 4 }
  0x13   : > { %311 = vperm.xlu0 (!%p167_p9), %490, %v305_v3   ;;  %321 = vperm.xlu1 (!%p167_p9), %491, %v307_v5   ;;  %v308_v10 = vld [vmem:[%s716_s2 + $0x18] sm:$0xff] (!%p167_p9)  ;;  %s189_s7 = scalar_lea.vmem (!%p167_p9), [#allocation3], %s188_s5  ;;  %s355_s12 = scalar_lea.sflag (!%p167_p9), [#allocation4], %s188_s5 }
  0x14   : > { %v350_v36 = vsub.s32 (!%p167_p9), 0, %v349_v33 }
  0x17   : > { %316 = vperm.xlu0 (!%p167_p9), %490, %v306_v9   ;;  %326 = vperm.xlu1 (!%p167_p9), %491, %v308_v10  }
  0x18   : > { %s191_s8 = scalar_select %p190_p10, %s607_s3, 1 }
  0x19   : > { %s557_s3 = smov [#allocation3]  }
  0x1a   : > { %s426_s11 = sshll.u32 %s191_s8, 3  ;;  %s367_s8 = sshll.u32 %s189_s7, 4  ;;  %s674_s8 = int_to_ptr.vmem [resolvable:$true] %s367_s8 }
  0x1b   : > { %s193_s14 = scalar_lea.vmem %s714_s0, %s426_s11  ;;  %345 = vperm.xlu0 %490, %v342_v11   ;;  %s672_s11 = scalar_lea.hbm %s718_s4, %s432_s6 }
  0x1c   : > { %v198_v6 = vld [vmem:[%s193_s14] sm:$0x1f]  ;;  %s492_s13 = scalar_lea.vmem %s674_s8, 16  ;;  %s496_s14 = sshll.u32 %s557_s3, 4  ;;  %s497_s14 = int_to_ptr.vmem [resolvable:$false] %s496_s14 }
  0x1d   : > { %440 = vmatprep.subr.msk.mxu0 %vm212_vm1, %v198_v6  ;;  %448 = vmatprep.subr.msk.mxu1 %vm212_vm1, %v198_v6  ;;  %p493_p11 = scmp.ne.s32.totalorder %s674_s8, %s492_s13  ;;  %s498_s15 = scalar_lea.vmem %s497_s14, 32 }
  0x1e   : > { %441 = vmatpush3.msk.msra.mxu0 %vm212_vm1, %v198_v6  ;;  %449 = vmatpush3.msk.msra.mxu1 %vm212_vm1, %v198_v6  ;;  %p499_p0 = scmp.lt.s32.totalorder %s674_s8, %s497_s14  ;;  %p500_p1 = scmp.lt.s32.totalorder %s498_s15, %s492_s13 }
  0x1f   : > { %443 = vmatmul.mubr.msk.f32.vlgmr.msra.gmra.mrb[0].mxu0 %vm199_vm0, %v195_v7  ;;  %446 = vmatmul.mubr.msk.f32.vlgmr.msra.gmra.mrb[0].mxu1 %vm199_vm0, %v197_v8  ;;  %p494_p12 = pnand %p493_p11, %p624_p5 }
  0x20   : > { %p501_p2 = por %p500_p1, %p499_p0 }
  0x21   : > { %p495_p13 = pneg %p494_p12 }
  0x23   : > { %p502_p3 = pnand %p501_p2, %p495_p13 }
  0x92   : > { %v312_v12 = vpop.permute.xlu0 %311  ;;  %v322_v13 = vpop.permute.xlu1 %321 }
  0x96   : > { %v317_v19 = vpop.permute.xlu0 %316  ;;  %v327_v25 = vpop.permute.xlu1 %326 }
  0x9a   : > { %v346_v38 = vpop.permute.xlu0 %345 }
  0x9b   : > { %v351_v40 = vrot.slane %v346_v38, %v350_v36 }
  0xf2   : > { %v444_v14 = vpop.f32.mrb[0].mxu0  ;;  %v447_v15 = vpop.f32.mrb[0].mxu1 }
  0xf3   : > { %v302_v16 = vmax.f32 %v444_v14, 0.0  ;;  %v282_v17 = vpop.f32.mrb[1].mxu0  ;;  %v292_v18 = vpop.f32.mrb[1].mxu1  ;;  %v304_v23 = vmax.f32 %v447_v15, 0.0 }
  0xf4   : > { %v301_v20 = vmax.f32 %v282_v17, 0.0  ;;  %v303_v21 = vmax.f32 %v292_v18, 0.0 }
  0xf5   : > { %v330_v22 = vmul.f32 %v317_v19, %v302_v16  ;;  %v332_v29 = vmul.f32 %v327_v25, %v304_v23 }
  0xf6   : > { %v329_v24 = vmul.f32 %v312_v12, %v301_v20  ;;  %v331_v27 = vmul.f32 %v322_v13, %v303_v21 }
  0xf8   : > { %v333_v26 = vadd.f32 %v330_v22, %v329_v24 }
  0xfa   : > { %v334_v28 = vadd.f32 %v333_v26, %v331_v27 }
  0xfc   : > { %v335_v31 = vadd.f32 %v334_v28, %v332_v29 }
  0xfe   : > { %v336_v32 = vrot.slane %v335_v31, 4 }
 0x100   : > { %v337_v34 = vadd.f32 %v336_v32, %v335_v31 }
 0x102   : > { %v338_v35 = vrot.slane %v337_v34, 2 }
 0x104   : > { %v339_v37 = vadd.f32 %v338_v35, %v337_v34 }
 0x106   : > { %v340_v39 = vrot.slane %v339_v37, 1 }
 0x108   : > { %v341_v41 = vadd.f32 %v340_v39, %v339_v37 }
 0x10a   : > { %v352_v42 = vadd.f32 %v351_v40, %v341_v41 }
 0x10c   : > { %353 = vst [vmem:[%s189_s7] sm:$0x1] %v352_v42 }
 0x10d   : > { %505 = shalt.err (!%p502_p3)
}
 0x10e   : > { %s506_s16 = scalar_lea.hbm %s672_s11, 16  ;;  %s510_s24 = scalar_lea.hbm %s718_s4, 32 }
 0x10f   : > { %p507_p4 = scmp.ne.s32.totalorder %s672_s11, %s506_s16  ;;  %p511_p9 = scmp.lt.u32.totalorder %s672_s11, %s718_s4 }
 0x110   : > { %p512_p10 = scmp.lt.u32.totalorder %s510_s24, %s506_s16  ;;  %p514_p12 = scmp.lt.u32.totalorder %s506_s16, %s672_s11 }
 0x111   : > { %p508_p7 = pnand %p507_p4, %p624_p5 }
 0x112   : > { %p513_p11 = por %p512_p10, %p511_p9 }
 0x113   : > { %p509_p8 = pneg %p508_p7 }
 0x114   : > { %p515_p13 = por %p514_p12, %p513_p11 }
 0x116   : > { %p516_p0 = pnand %p515_p13, %p509_p8 }
 0x118   : > { %519 = shalt.err (!%p516_p0)
}
 0x119   : > { %450 = dma.vmem_to_hbm [thread:$0]  (%p624_p5), %s674_s8, 16, %s672_s11, %s355_s12  }
 0x11a PF: > { %p456_p1 = scmp.ge.s32.totalorder %s554_s20, 2  ;;  %s379_s30 = sand.u32 1, %s542_s17  }
 0x11b   : > { %s380_s5 = scalar_lea.sflag [#allocation4], %s379_s30 }
 0x11c   : > { %p453_p2 = pnand %p456_p1, %p628_p6 }
 0x11e   : > { %537 = dma.done.wait (!%p453_p2), %s380_s5, 16  }
 0x11f   : > { %539 = vsyncadd (!%p453_p2), %s380_s5, 4294967280  ;;  %p16_p3 = scmp.ge.s32.totalorder %s611_s22, 4   ;;  %s721_s17 = smov %s546_s18 }
 0x120   : > { %s722_s18 = smov %s550_s19  ;;  %s723_s19 = smov %s622_s25 }
 0x121   : > { %s724_s20 = smov %s611_s22  ;;  %18 = sbr.rel (!%p16_p3) target bundleno = 6 (0x6), region = 71 }
 0x128   :  { %384 = vsyncpa [#allocation4], 1 }
 0x129   :  { %386 = vsyncpa [#allocation4 + $0x1], 1 }

</bundles_post_ra>
